<compile_context>
chip_gen: v7x
topology: tpu7x:2x2x1
jax: 0.10.0
libtpu: 0.0.40
codegen_flags: <defaults>
</compile_context>

<pallas_src>
import functools

import jax
import jax.numpy as jnp
from jax.experimental import pallas as pl
from jax.experimental.pallas import tpu as pltpu


def _pad_to(n, m):
    return ((n + m - 1) // m) * m


def _feature_pad(d):
    # Lane-dense padding: >128 features align to 256 so K/N fill a full
    # v6e/v7x 256-wide MXU tile; <=128 stays at 128 (v5e's native tile).
    return _pad_to(d, 256) if d > 128 else 128


def _fused_mlp_kernel(x_ref, *refs, n_hidden):
    """Fused MLP on one batch tile.

    refs = (w0, b0, w1, b1, ..., w_recon, b_recon, o_ref)
      x_ref : [BT, D0p]      bf16
      w_i   : [Din_p, Dout_p] bf16,  b_i: [1, Dout_p] bf16
      o_ref : [BT, DOUT_p]   f32
    The running activation never leaves VMEM/vregs between layers.
    """
    o_ref = refs[-1]
    wb = refs[:-1]

    h = x_ref[...]                                              # bf16
    for li in range(n_hidden):
        w = wb[2 * li][...]
        b = wb[2 * li + 1][...]
        a = jnp.dot(h, w, preferred_element_type=jnp.float32)   # f32 accumulate
        a = a + b.astype(jnp.float32)
        h = jnp.maximum(a, 0.0).astype(jnp.bfloat16)            # bf16 for next MXU op

    w = wb[2 * n_hidden][...]
    b = wb[2 * n_hidden + 1][...]
    y = jnp.dot(h, w, preferred_element_type=jnp.float32) + b.astype(jnp.float32)
    # sigmoid(y) = 0.5 * tanh(0.5 * y) + 0.5  : single EUP push / element and
    # the result is strictly in [0, 1].
    o_ref[...] = (0.5 * jnp.tanh(0.5 * y) + 0.5).astype(o_ref.dtype)


class DecoderPallas:
    """Mirror of the PyTorch Decoder: latent -> hidden_dims -> input_dim."""

    def __init__(self, latent_dim, hidden_dims, input_dim, key):
        self.latent_dim = latent_dim
        self.input_dim = input_dim
        neurons = [latent_dim, *hidden_dims, input_dim]
        self.dims = neurons
        self.dims_pad = [_feature_pad(d) for d in neurons]
        self.n_hidden = len(hidden_dims)

        # ---- unpadded f32 params (PyTorch-equivalent; used by the reference) ----
        self.params = []
        keys = jax.random.split(key, len(neurons) - 1)
        for i in range(1, len(neurons)):
            kw, kb = jax.random.split(keys[i - 1])
            bound = 1.0 / (neurons[i - 1] ** 0.5)   # nn.Linear default init scale
            w = jax.random.uniform(
                kw, (neurons[i - 1], neurons[i]), jnp.float32, -bound, bound)
            b = jax.random.uniform(kb, (neurons[i],), jnp.float32, -bound, bound)
            self.params.append((w, b))
        self.recon = self.params[-1]
        self.params = self.params[:-1]

        # ---- bf16, zero-padded params for the fused kernel (built once) ----
        # Zero padding is semantics-preserving: padded weight rows/cols and
        # bias entries are zero, ReLU(0)=0, padded output cols are sliced off.
        self.padded = []
        for li, (w, b) in enumerate(self.params + [self.recon]):
            din_p, dout_p = self.dims_pad[li], self.dims_pad[li + 1]
            w_p = jnp.zeros((din_p, dout_p), jnp.bfloat16)
            w_p = w_p.at[: w.shape[0], : w.shape[1]].set(w.astype(jnp.bfloat16))
            b_p = jnp.zeros((1, dout_p), jnp.bfloat16)
            b_p = b_p.at[0, : b.shape[0]].set(b.astype(jnp.bfloat16))
            self.padded.append((w_p, b_p))

    # ----------------------------------------------------------------------
    def _pallas_forward(self, x_p, bt, single_buffer_weights):
        b_pad, din_p = x_p.shape
        dout_p = self.dims_pad[-1]
        kernel = functools.partial(_fused_mlp_kernel, n_hidden=self.n_hidden)

        def const_spec(shape):
            # Weights/biases have a constant index_map -> single-buffer them
            # (halves their VMEM footprint) when the API supports it.
            if single_buffer_weights:
                return pl.BlockSpec(shape, lambda i: (0, 0),
                                    pipeline_mode=pl.Buffered(1))
            return pl.BlockSpec(shape, lambda i: (0, 0))

        in_specs = [pl.BlockSpec((bt, din_p), lambda i: (i, 0))]
        flat_wb = []
        for w_p, b_p in self.padded:
            in_specs.append(const_spec(w_p.shape))
            in_specs.append(const_spec(b_p.shape))
            flat_wb.extend([w_p, b_p])

        # Explicit VMEM budget: weights (x buffer factor) + double-buffered
        # in/out batch tiles + f32 activation slack, then 2x headroom.
        buf = 1 if single_buffer_weights else 2
        wb_bytes = sum(int(a.size) * a.dtype.itemsize for a in flat_wb) * buf
        io_bytes = 2 * (bt * din_p * 2 + bt * dout_p * 4)
        act_bytes = 2 * bt * max(self.dims_pad) * 4
        vmem_limit = int(min(128 << 20,
                             max(16 << 20, 2 * (wb_bytes + io_bytes + act_bytes))))

        return pl.pallas_call(
            kernel,
            out_shape=jax.ShapeDtypeStruct((b_pad, dout_p), jnp.float32),
            grid=(b_pad // bt,),
            in_specs=in_specs,
            out_specs=pl.BlockSpec((bt, dout_p), lambda i: (i, 0)),
            compiler_params=pltpu.CompilerParams(
                dimension_semantics=("parallel",),
                vmem_limit_bytes=vmem_limit,
            ),
        )(x_p, *flat_wb)

    # ----------------------------------------------------------------------
    def __call__(self, x):
        B, din = x.shape
        assert din == self.latent_dim
        din_p = self.dims_pad[0]

        # Batch tile: full sublanes.  For B > 8 keep the grid >= 2 so both v7x
        # TensorCores get work (the grid axis is "parallel"), tiling up to 256
        # rows to amortize the ~0.35 us per-grid-step pipeline overhead.
        b8 = _pad_to(B, 8)
        if b8 <= 8:
            bt = b8
        else:
            bt = min(256, _pad_to((b8 + 1) // 2, 8))
        b_pad = _pad_to(b8, bt)

        # Single fused bf16 cast + pad (padded rows/cols hit zero weights and
        # are sliced off below).
        # TODO(synk): for very large B, mask the ragged last tile in-kernel
        # instead of materializing the padded copy + output slice.
        x_b = x.astype(jnp.bfloat16)
        if (b_pad, din_p) != (B, din):
            x_b = jnp.pad(x_b, ((0, b_pad - B), (0, din_p - din)))

        try:
            out = jax.block_until_ready(self._pallas_forward(x_b, bt, True))
        except Exception:
            # pipeline_mode=pl.Buffered(1) unsupported on this jax version:
            # fall back to default (double-buffered) weight specs.
            out = self._pallas_forward(x_b, bt, False)

        return out[:B, : self.input_dim]


def reference_forward(decoder, x):
    """Pure-JAX f32 reference of the same forward pass."""
    for w, b in decoder.params:
        x = jnp.maximum(jnp.dot(x, w) + b, 0.0)
    w, b = decoder.recon
    return jax.nn.sigmoid(jnp.dot(x, w) + b)


if __name__ == "__main__":
    key = jax.random.PRNGKey(0)
    k_params, k_x1, k_x2 = jax.random.split(key, 3)

    latent_dim = 8
    hidden_dims = [32, 64]
    input_dim = 16

    decoder = DecoderPallas(latent_dim, hidden_dims, input_dim, k_params)

    # Small batch (single tile) and a larger batch (multi-tile parallel grid).
    for k_x, batch in ((k_x1, 4), (k_x2, 20)):
        z = jax.random.normal(k_x, (batch, latent_dim), jnp.float32)
        out = jax.block_until_ready(decoder(z))
        ref = reference_forward(decoder, z)
        assert out.shape == (batch, input_dim)
        err = float(jnp.max(jnp.abs(out - ref)))
        # bf16 weights/activations with f32 accumulation: loose tolerance.
        assert err < 2e-2, err

    print("KERNEL_OK")
</pallas_src>

<mosaic_0001>
module attributes {stable_mosaic.version = 11 : i64} {
  func.func @_fused_mlp_kernel(%arg0: i32, %arg1: memref<8x128xbf16, #tpu.memory_space<vmem>>, %arg2: memref<128x128xbf16, #tpu.memory_space<vmem>>, %arg3: memref<1x128xbf16, #tpu.memory_space<vmem>>, %arg4: memref<128x128xbf16, #tpu.memory_space<vmem>>, %arg5: memref<1x128xbf16, #tpu.memory_space<vmem>>, %arg6: memref<128x128xbf16, #tpu.memory_space<vmem>>, %arg7: memref<1x128xbf16, #tpu.memory_space<vmem>>, %arg8: memref<8x128xf32, #tpu.memory_space<vmem>>) attributes {dimension_semantics = [#tpu.dimension_semantics<parallel>], iteration_bounds = array<i64: 1>, scalar_prefetch = 0 : i64, scratch_operands = 0 : i64, tpu.core_type = #tpu.core_type<tc>, window_params = [{transform_indices = @transform_0, window_bounds = array<i64: 8, 128>}, {pipeline_mode = #tpu.pipeline_mode<synchronous>, transform_indices = @transform_1, window_bounds = array<i64: 128, 128>}, {pipeline_mode = #tpu.pipeline_mode<synchronous>, transform_indices = @transform_2, window_bounds = array<i64: 1, 128>}, {pipeline_mode = #tpu.pipeline_mode<synchronous>, transform_indices = @transform_3, window_bounds = array<i64: 128, 128>}, {pipeline_mode = #tpu.pipeline_mode<synchronous>, transform_indices = @transform_4, window_bounds = array<i64: 1, 128>}, {pipeline_mode = #tpu.pipeline_mode<synchronous>, transform_indices = @transform_5, window_bounds = array<i64: 128, 128>}, {pipeline_mode = #tpu.pipeline_mode<synchronous>, transform_indices = @transform_6, window_bounds = array<i64: 1, 128>}, {transform_indices = @transform_7, window_bounds = array<i64: 8, 128>}]} {
    %c0 = arith.constant 0 : index
    %c0_0 = arith.constant 0 : index
    %0 = vector.load %arg1[%c0, %c0_0] : memref<8x128xbf16, #tpu.memory_space<vmem>>, vector<8x128xbf16>
    %c0_1 = arith.constant 0 : index
    %c0_2 = arith.constant 0 : index
    %1 = vector.load %arg2[%c0_1, %c0_2] : memref<128x128xbf16, #tpu.memory_space<vmem>>, vector<128x128xbf16>
    %c0_3 = arith.constant 0 : index
    %c0_4 = arith.constant 0 : index
    %2 = vector.load %arg3[%c0_3, %c0_4] : memref<1x128xbf16, #tpu.memory_space<vmem>>, vector<1x128xbf16>
    %cst = arith.constant dense<0.000000e+00> : vector<8x128xf32>
    %3 = tpu.matmul %0, %1, %cst {dimension_numbers = #tpu.dot_dimension_numbers<[1], [0], [0], [1], [0, 0, 1, 1], [], []>} : vector<8x128xbf16>, vector<128x128xbf16>, vector<8x128xf32> -> vector<8x128xf32>
    %4 = arith.extf %2 : vector<1x128xbf16> to vector<1x128xf32>
    %5 = vector.broadcast %4 : vector<1x128xf32> to vector<8x128xf32>
    %6 = arith.addf %3, %5 : vector<8x128xf32>
    %cst_5 = arith.constant 0.000000e+00 : f32
    %7 = vector.broadcast %cst_5 : f32 to vector<8x128xf32>
    %8 = arith.maximumf %6, %7 : vector<8x128xf32>
    %9 = arith.truncf %8 : vector<8x128xf32> to vector<8x128xbf16>
    %c0_6 = arith.constant 0 : index
    %c0_7 = arith.constant 0 : index
    %10 = vector.load %arg4[%c0_6, %c0_7] : memref<128x128xbf16, #tpu.memory_space<vmem>>, vector<128x128xbf16>
    %c0_8 = arith.constant 0 : index
    %c0_9 = arith.constant 0 : index
    %11 = vector.load %arg5[%c0_8, %c0_9] : memref<1x128xbf16, #tpu.memory_space<vmem>>, vector<1x128xbf16>
    %cst_10 = arith.constant dense<0.000000e+00> : vector<8x128xf32>
    %12 = tpu.matmul %9, %10, %cst_10 {dimension_numbers = #tpu.dot_dimension_numbers<[1], [0], [0], [1], [0, 0, 1, 1], [], []>} : vector<8x128xbf16>, vector<128x128xbf16>, vector<8x128xf32> -> vector<8x128xf32>
    %13 = arith.extf %11 : vector<1x128xbf16> to vector<1x128xf32>
    %14 = vector.broadcast %13 : vector<1x128xf32> to vector<8x128xf32>
    %15 = arith.addf %12, %14 : vector<8x128xf32>
    %cst_11 = arith.constant 0.000000e+00 : f32
    %16 = vector.broadcast %cst_11 : f32 to vector<8x128xf32>
    %17 = arith.maximumf %15, %16 : vector<8x128xf32>
    %18 = arith.truncf %17 : vector<8x128xf32> to vector<8x128xbf16>
    %c0_12 = arith.constant 0 : index
    %c0_13 = arith.constant 0 : index
    %19 = vector.load %arg6[%c0_12, %c0_13] : memref<128x128xbf16, #tpu.memory_space<vmem>>, vector<128x128xbf16>
    %c0_14 = arith.constant 0 : index
    %c0_15 = arith.constant 0 : index
    %20 = vector.load %arg7[%c0_14, %c0_15] : memref<1x128xbf16, #tpu.memory_space<vmem>>, vector<1x128xbf16>
    %cst_16 = arith.constant dense<0.000000e+00> : vector<8x128xf32>
    %21 = tpu.matmul %18, %19, %cst_16 {dimension_numbers = #tpu.dot_dimension_numbers<[1], [0], [0], [1], [0, 0, 1, 1], [], []>} : vector<8x128xbf16>, vector<128x128xbf16>, vector<8x128xf32> -> vector<8x128xf32>
    %22 = arith.extf %20 : vector<1x128xbf16> to vector<1x128xf32>
    %23 = vector.broadcast %22 : vector<1x128xf32> to vector<8x128xf32>
    %24 = arith.addf %21, %23 : vector<8x128xf32>
    %cst_17 = arith.constant 5.000000e-01 : f32
    %25 = vector.broadcast %cst_17 : f32 to vector<8x128xf32>
    %26 = arith.mulf %25, %24 : vector<8x128xf32>
    %27 = math.tanh %26 : vector<8x128xf32>
    %cst_18 = arith.constant 5.000000e-01 : f32
    %28 = vector.broadcast %cst_18 : f32 to vector<8x128xf32>
    %29 = arith.mulf %28, %27 : vector<8x128xf32>
    %cst_19 = arith.constant 5.000000e-01 : f32
    %30 = vector.broadcast %cst_19 : f32 to vector<8x128xf32>
    %31 = arith.addf %29, %30 : vector<8x128xf32>
    %c0_20 = arith.constant 0 : index
    %c0_21 = arith.constant 0 : index
    %32 = vector.load %arg8[%c0_20, %c0_21] : memref<8x128xf32, #tpu.memory_space<vmem>>, vector<8x128xf32>
    tpu.vector_store %arg8[%c0_20, %c0_21], %31 {strides = array<i32>} : memref<8x128xf32, #tpu.memory_space<vmem>>, vector<8x128xf32>,
    return
  }
  func.func @transform_0(%arg0: i32) -> (i32, i32) {
    %c0_i32 = arith.constant 0 : i32
    %c0_i32_0 = arith.constant 0 : i32
    return %arg0, %c0_i32 : i32, i32
  }
  func.func @transform_1(%arg0: i32) -> (i32, i32) {
    %c0_i32 = arith.constant 0 : i32
    %c0_i32_0 = arith.constant 0 : i32
    %c0_i32_1 = arith.constant 0 : i32
    return %c0_i32, %c0_i32_0 : i32, i32
  }
  func.func @transform_2(%arg0: i32) -> (i32, i32) {
    %c0_i32 = arith.constant 0 : i32
    %c0_i32_0 = arith.constant 0 : i32
    %c0_i32_1 = arith.constant 0 : i32
    return %c0_i32, %c0_i32_0 : i32, i32
  }
  func.func @transform_3(%arg0: i32) -> (i32, i32) {
    %c0_i32 = arith.constant 0 : i32
    %c0_i32_0 = arith.constant 0 : i32
    %c0_i32_1 = arith.constant 0 : i32
    return %c0_i32, %c0_i32_0 : i32, i32
  }
  func.func @transform_4(%arg0: i32) -> (i32, i32) {
    %c0_i32 = arith.constant 0 : i32
    %c0_i32_0 = arith.constant 0 : i32
    %c0_i32_1 = arith.constant 0 : i32
    return %c0_i32, %c0_i32_0 : i32, i32
  }
  func.func @transform_5(%arg0: i32) -> (i32, i32) {
    %c0_i32 = arith.constant 0 : i32
    %c0_i32_0 = arith.constant 0 : i32
    %c0_i32_1 = arith.constant 0 : i32
    return %c0_i32, %c0_i32_0 : i32, i32
  }
  func.func @transform_6(%arg0: i32) -> (i32, i32) {
    %c0_i32 = arith.constant 0 : i32
    %c0_i32_0 = arith.constant 0 : i32
    %c0_i32_1 = arith.constant 0 : i32
    return %c0_i32, %c0_i32_0 : i32, i32
  }
  func.func @transform_7(%arg0: i32) -> (i32, i32) {
    %c0_i32 = arith.constant 0 : i32
    %c0_i32_0 = arith.constant 0 : i32
    return %arg0, %c0_i32 : i32, i32
  }
}

module attributes {stable_mosaic.version = 11 : i64} {
  func.func @_fused_mlp_kernel(%arg0: i32, %arg1: memref<8x128xbf16, #tpu.memory_space<vmem>>, %arg2: memref<128x128xbf16, #tpu.memory_space<vmem>>, %arg3: memref<1x128xbf16, #tpu.memory_space<vmem>>, %arg4: memref<128x128xbf16, #tpu.memory_space<vmem>>, %arg5: memref<1x128xbf16, #tpu.memory_space<vmem>>, %arg6: memref<128x128xbf16, #tpu.memory_space<vmem>>, %arg7: memref<1x128xbf16, #tpu.memory_space<vmem>>, %arg8: memref<8x128xf32, #tpu.memory_space<vmem>>) attributes {dimension_semantics = [#tpu.dimension_semantics<parallel>], iteration_bounds = array<i64: 1>, scalar_prefetch = 0 : i64, scratch_operands = 0 : i64, tpu.core_type = #tpu.core_type<tc>, window_params = [{transform_indices = @transform_0, window_bounds = array<i64: 8, 128>}, {pipeline_mode = #tpu.pipeline_mode<synchronous>, transform_indices = @transform_1, window_bounds = array<i64: 128, 128>}, {pipeline_mode = #tpu.pipeline_mode<synchronous>, transform_indices = @transform_2, window_bounds = array<i64: 1, 128>}, {pipeline_mode = #tpu.pipeline_mode<synchronous>, transform_indices = @transform_3, window_bounds = array<i64: 128, 128>}, {pipeline_mode = #tpu.pipeline_mode<synchronous>, transform_indices = @transform_4, window_bounds = array<i64: 1, 128>}, {pipeline_mode = #tpu.pipeline_mode<synchronous>, transform_indices = @transform_5, window_bounds = array<i64: 128, 128>}, {pipeline_mode = #tpu.pipeline_mode<synchronous>, transform_indices = @transform_6, window_bounds = array<i64: 1, 128>}, {transform_indices = @transform_7, window_bounds = array<i64: 8, 128>}]} {
    %c0 = arith.constant 0 : index
    %c0_0 = arith.constant 0 : index
    %0 = vector.load %arg1[%c0, %c0_0] : memref<8x128xbf16, #tpu.memory_space<vmem>>, vector<8x128xbf16>
    %c0_1 = arith.constant 0 : index
    %c0_2 = arith.constant 0 : index
    %1 = vector.load %arg2[%c0_1, %c0_2] : memref<128x128xbf16, #tpu.memory_space<vmem>>, vector<128x128xbf16>
    %c0_3 = arith.constant 0 : index
    %c0_4 = arith.constant 0 : index
    %2 = vector.load %arg3[%c0_3, %c0_4] : memref<1x128xbf16, #tpu.memory_space<vmem>>, vector<1x128xbf16>
    %cst = arith.constant dense<0.000000e+00> : vector<8x128xf32>
    %3 = tpu.matmul %0, %1, %cst {dimension_numbers = #tpu.dot_dimension_numbers<[1], [0], [0], [1], [0, 0, 1, 1], [], []>} : vector<8x128xbf16>, vector<128x128xbf16>, vector<8x128xf32> -> vector<8x128xf32>
    %4 = arith.extf %2 : vector<1x128xbf16> to vector<1x128xf32>
    %5 = vector.broadcast %4 : vector<1x128xf32> to vector<8x128xf32>
    %6 = arith.addf %3, %5 : vector<8x128xf32>
    %cst_5 = arith.constant 0.000000e+00 : f32
    %7 = vector.broadcast %cst_5 : f32 to vector<8x128xf32>
    %8 = arith.maximumf %6, %7 : vector<8x128xf32>
    %9 = arith.truncf %8 : vector<8x128xf32> to vector<8x128xbf16>
    %c0_6 = arith.constant 0 : index
    %c0_7 = arith.constant 0 : index
    %10 = vector.load %arg4[%c0_6, %c0_7] : memref<128x128xbf16, #tpu.memory_space<vmem>>, vector<128x128xbf16>
    %c0_8 = arith.constant 0 : index
    %c0_9 = arith.constant 0 : index
    %11 = vector.load %arg5[%c0_8, %c0_9] : memref<1x128xbf16, #tpu.memory_space<vmem>>, vector<1x128xbf16>
    %cst_10 = arith.constant dense<0.000000e+00> : vector<8x128xf32>
    %12 = tpu.matmul %9, %10, %cst_10 {dimension_numbers = #tpu.dot_dimension_numbers<[1], [0], [0], [1], [0, 0, 1, 1], [], []>} : vector<8x128xbf16>, vector<128x128xbf16>, vector<8x128xf32> -> vector<8x128xf32>
    %13 = arith.extf %11 : vector<1x128xbf16> to vector<1x128xf32>
    %14 = vector.broadcast %13 : vector<1x128xf32> to vector<8x128xf32>
    %15 = arith.addf %12, %14 : vector<8x128xf32>
    %cst_11 = arith.constant 0.000000e+00 : f32
    %16 = vector.broadcast %cst_11 : f32 to vector<8x128xf32>
    %17 = arith.maximumf %15, %16 : vector<8x128xf32>
    %18 = arith.truncf %17 : vector<8x128xf32> to vector<8x128xbf16>
    %c0_12 = arith.constant 0 : index
    %c0_13 = arith.constant 0 : index
    %19 = vector.load %arg6[%c0_12, %c0_13] : memref<128x128xbf16, #tpu.memory_space<vmem>>, vector<128x128xbf16>
    %c0_14 = arith.constant 0 : index
    %c0_15 = arith.constant 0 : index
    %20 = vector.load %arg7[%c0_14, %c0_15] : memref<1x128xbf16, #tpu.memory_space<vmem>>, vector<1x128xbf16>
    %cst_16 = arith.constant dense<0.000000e+00> : vector<8x128xf32>
    %21 = tpu.matmul %18, %19, %cst_16 {dimension_numbers = #tpu.dot_dimension_numbers<[1], [0], [0], [1], [0, 0, 1, 1], [], []>} : vector<8x128xbf16>, vector<128x128xbf16>, vector<8x128xf32> -> vector<8x128xf32>
    %22 = arith.extf %20 : vector<1x128xbf16> to vector<1x128xf32>
    %23 = vector.broadcast %22 : vector<1x128xf32> to vector<8x128xf32>
    %24 = arith.addf %21, %23 : vector<8x128xf32>
    %cst_17 = arith.constant 5.000000e-01 : f32
    %25 = vector.broadcast %cst_17 : f32 to vector<8x128xf32>
    %26 = arith.mulf %25, %24 : vector<8x128xf32>
    %27 = math.tanh %26 : vector<8x128xf32>
    %cst_18 = arith.constant 5.000000e-01 : f32
    %28 = vector.broadcast %cst_18 : f32 to vector<8x128xf32>
    %29 = arith.mulf %28, %27 : vector<8x128xf32>
    %cst_19 = arith.constant 5.000000e-01 : f32
    %30 = vector.broadcast %cst_19 : f32 to vector<8x128xf32>
    %31 = arith.addf %29, %30 : vector<8x128xf32>
    %c0_20 = arith.constant 0 : index
    %c0_21 = arith.constant 0 : index
    %32 = vector.load %arg8[%c0_20, %c0_21] : memref<8x128xf32, #tpu.memory_space<vmem>>, vector<8x128xf32>
    tpu.vector_store %arg8[%c0_20, %c0_21], %31 {strides = array<i32>} : memref<8x128xf32, #tpu.memory_space<vmem>>, vector<8x128xf32>,
    return
  }
  func.func @transform_0(%arg0: i32) -> (i32, i32) {
    %c0_i32 = arith.constant 0 : i32
    %c0_i32_0 = arith.constant 0 : i32
    return %arg0, %c0_i32 : i32, i32
  }
  func.func @transform_1(%arg0: i32) -> (i32, i32) {
    %c0_i32 = arith.constant 0 : i32
    %c0_i32_0 = arith.constant 0 : i32
    %c0_i32_1 = arith.constant 0 : i32
    return %c0_i32, %c0_i32_0 : i32, i32
  }
  func.func @transform_2(%arg0: i32) -> (i32, i32) {
    %c0_i32 = arith.constant 0 : i32
    %c0_i32_0 = arith.constant 0 : i32
    %c0_i32_1 = arith.constant 0 : i32
    return %c0_i32, %c0_i32_0 : i32, i32
  }
  func.func @transform_3(%arg0: i32) -> (i32, i32) {
    %c0_i32 = arith.constant 0 : i32
    %c0_i32_0 = arith.constant 0 : i32
    %c0_i32_1 = arith.constant 0 : i32
    return %c0_i32, %c0_i32_0 : i32, i32
  }
  func.func @transform_4(%arg0: i32) -> (i32, i32) {
    %c0_i32 = arith.constant 0 : i32
    %c0_i32_0 = arith.constant 0 : i32
    %c0_i32_1 = arith.constant 0 : i32
    return %c0_i32, %c0_i32_0 : i32, i32
  }
  func.func @transform_5(%arg0: i32) -> (i32, i32) {
    %c0_i32 = arith.constant 0 : i32
    %c0_i32_0 = arith.constant 0 : i32
    %c0_i32_1 = arith.constant 0 : i32
    return %c0_i32, %c0_i32_0 : i32, i32
  }
  func.func @transform_6(%arg0: i32) -> (i32, i32) {
    %c0_i32 = arith.constant 0 : i32
    %c0_i32_0 = arith.constant 0 : i32
    %c0_i32_1 = arith.constant 0 : i32
    return %c0_i32, %c0_i32_0 : i32, i32
  }
  func.func @transform_7(%arg0: i32) -> (i32, i32) {
    %c0_i32 = arith.constant 0 : i32
    %c0_i32_0 = arith.constant 0 : i32
    return %arg0, %c0_i32 : i32, i32
  }
}

</mosaic_0001>

<bundles_post_ra>
// kernel: tpu_custom_call.1
= control target key start
LH: loop header
LB: loop body
LE: loop exit
PB: predicated region body
PF: predicated region fallthrough
CT: control target
= control target key end

     0   :  { %12 = vsyncpa [#allocation3], 0  ;;  %s859_s0 = inlined_call_operand.hbm [shape: bf16[8,128], index: 0, kind: input, shape index: {}]   ;;  %s860_s1 = inlined_call_operand.hbm [shape: bf16[128,128], index: 1, kind: input, shape index: {}]   ;;  %s861_s2 = inlined_call_operand.vmem [shape: bf16[1,128], index: 2, kind: input, shape index: {}]   ;;  %s862_s3 = inlined_call_operand.hbm [shape: bf16[128,128], index: 3, kind: input, shape index: {}]   ;;  %s863_s4 = inlined_call_operand.vmem [shape: bf16[1,128], index: 4, kind: input, shape index: {}]   ;;  %s864_s5 = inlined_call_operand.hbm [shape: bf16[128,128], index: 5, kind: input, shape index: {}]   ;;  %s865_s6 = inlined_call_operand.vmem [shape: bf16[1,128], index: 6, kind: input, shape index: {}]   ;;  %s866_s7 = inlined_call_operand.hbm [shape: f32[8,128], index: 7, kind: output, shape index: {}]  }
   0x1   :  { %13 = vsyncpa [#allocation6], 0 }
   0x2   :  { %14 = vsyncpa [#allocation9], 0 }
   0x3   :  { %15 = vsyncpa [#allocation4], 0  ;;  %s702_s24 = smov [#allocation5]   ;;  %s584_s28 = scalar_lea.hbm %s860_s1, 1024 }
   0x4   :  { %s31_s25 = sshll.u32 %s702_s24, 4  ;;  %p585_p0 = scmp.ne.s32.totalorder %s860_s1, %s584_s28  ;;  %s32_s25 = int_to_ptr.vmem [resolvable:$true] %s31_s25 }
   0x5   :  { %p588_p1 = scmp.lt.u32.totalorder %s584_s28, %s860_s1 }
   0x7   :  { %p590_p2 = pnand %p588_p1, %p585_p0 }
   0x9   :  { %593 = shalt.err (!%p590_p2)
}
   0xa   :  { %s594_s10 = scalar_lea.vmem %s32_s25, 1024  ;;  %p599_p4 = scmp.lt.s32.totalorder %s32_s25, %s32_s25 }
   0xb   :  { %p595_p3 = scmp.ne.s32.totalorder %s32_s25, %s594_s10  ;;  %p600_p5 = scmp.lt.s32.totalorder %s594_s10, %s594_s10 }
   0xd   :  { %p601_p6 = por %p600_p5, %p599_p4 }
   0xf   :  { %p602_p7 = pnand %p601_p6, %p595_p3 }
  0x11   :  { %605 = shalt.err (!%p602_p7)
}
  0x12   :  { %s703_s11 = smov 64   ;;  %s704_s12 = smov 4  }
  0x13   :  { %37 = dma.hbm_to_vmem [thread:$0]  %s860_s1, 1024, %s32_s25, [#allocation6], %s703_s11, %s703_s11, %s704_s12  }
  0x14   :  { %s705_s15 = smov [#allocation2]   ;;  %s706_s17 = smov [#allocation7]  }
  0x15   :  { %s22_s16 = sshll.u32 %s705_s15, 4  ;;  %s45_s18 = sshll.u32 %s706_s17, 4  ;;  %s23_s16 = int_to_ptr.vmem [resolvable:$true] %s22_s16  ;;  %s46_s18 = int_to_ptr.vmem [resolvable:$true] %s45_s18 }
  0x16   :  { %s606_s21 = scalar_lea.hbm %s859_s0, 64 }
  0x17   :  { %p607_p8 = scmp.ne.s32.totalorder %s859_s0, %s606_s21  ;;  %p610_p9 = scmp.lt.u32.totalorder %s606_s21, %s859_s0 }
  0x19   :  { %p612_p10 = pnand %p610_p9, %p607_p8 }
  0x1b   :  { %615 = shalt.err (!%p612_p10)
}
  0x1c   :  { %s616_s1 = scalar_lea.vmem %s23_s16, 64  ;;  %p621_p12 = scmp.lt.s32.totalorder %s23_s16, %s23_s16 }
  0x1d   :  { %p617_p11 = scmp.ne.s32.totalorder %s23_s16, %s616_s1  ;;  %p622_p13 = scmp.lt.s32.totalorder %s616_s1, %s616_s1 }
  0x1f   :  { %p623_p0 = por %p622_p13, %p621_p12 }
  0x21   :  { %p624_p1 = pnand %p623_p0, %p617_p11 }
  0x23   :  { %627 = shalt.err (!%p624_p1)
}
  0x24   :  { %25 = dma.hbm_to_vmem [thread:$0]  %s859_s0, 64, %s23_s16, [#allocation3]  }
  0x25   :  { %s628_s30 = scalar_lea.hbm %s862_s3, 1024 }
  0x26   :  { %p629_p2 = scmp.ne.s32.totalorder %s862_s3, %s628_s30  ;;  %p632_p3 = scmp.lt.u32.totalorder %s628_s30, %s862_s3 }
  0x28   :  { %p634_p4 = pnand %p632_p3, %p629_p2 }
  0x2a   :  { %637 = shalt.err (!%p634_p4)
}
  0x2b   :  { %s638_s14 = scalar_lea.vmem %s46_s18, 1024  ;;  %p643_p6 = scmp.lt.s32.totalorder %s46_s18, %s46_s18 }
  0x2c   :  { %p639_p5 = scmp.ne.s32.totalorder %s46_s18, %s638_s14  ;;  %p644_p7 = scmp.lt.s32.totalorder %s638_s14, %s638_s14 }
  0x2e   :  { %p645_p8 = por %p644_p7, %p643_p6 }
  0x30   :  { %p646_p9 = pnand %p645_p8, %p639_p5 }
  0x32   :  { %649 = shalt.err (!%p646_p9)
}
  0x33   :  { %51 = dma.hbm_to_vmem [thread:$0]  %s862_s3, 1024, %s46_s18, [#allocation6], %s703_s11, %s703_s11, %s704_s12  }
  0x34   :  { %s707_s16 = smov [#allocation8]   ;;  %s650_s21 = scalar_lea.hbm %s864_s5, 1024 }
  0x35   :  { %s59_s17 = sshll.u32 %s707_s16, 4  ;;  %p651_p10 = scmp.ne.s32.totalorder %s864_s5, %s650_s21  ;;  %s60_s17 = int_to_ptr.vmem [resolvable:$true] %s59_s17 }
  0x36   :  { %p654_p11 = scmp.lt.u32.totalorder %s650_s21, %s864_s5 }
  0x38   :  { %p656_p12 = pnand %p654_p11, %p651_p10 }
  0x3a   :  { %659 = shalt.err (!%p656_p12)
}
  0x3b   :  { %s660_s1 = scalar_lea.vmem %s60_s17, 1024  ;;  %p665_p0 = scmp.lt.s32.totalorder %s60_s17, %s60_s17 }
  0x3c   :  { %p661_p13 = scmp.ne.s32.totalorder %s60_s17, %s660_s1  ;;  %p666_p1 = scmp.lt.s32.totalorder %s660_s1, %s660_s1 }
  0x3e   :  { %p667_p2 = por %p666_p1, %p665_p0 }
  0x40   :  { %p668_p3 = pnand %p667_p2, %p661_p13 }
  0x42   :  { %671 = shalt.err (!%p668_p3)
}
  0x43   :  { %65 = dma.hbm_to_vmem [thread:$0]  %s864_s5, 1024, %s60_s17, [#allocation9], %s703_s11, %s703_s11, %s704_s12  }
  0x44   :  { %694 = dma.done.wait [#allocation3], 64  }
  0x45   :  { %695 = vsyncadd [#allocation3], 4294967232 }
  0x46   :  { %696 = dma.done.wait [#allocation6], 2048  }
  0x47   :  { %697 = vsyncadd [#allocation6], 4294965248 }
  0x48   :  { %698 = dma.done.wait [#allocation9], 1024  }
  0x49   :  { %699 = vsyncadd [#allocation9], 4294966272  ;;  %v708_v0 = vmov 0.0   ;;  %vm709_vm0 = vmmov 0   ;;  %v558_v1 = vld [vmem:[#allocation5] sm:$0xff]   ;;  %v559_v2 = vld [vmem:[#allocation5 + $0x8] sm:$0xff]   ;;  %v100_v24 = vlaneseq }
  0x4a   :  { %489 = vmatprep.subr.bf16.mxu0 %v708_v0  ;;  %505 = vmatprep.mubr.msk.bf16.mxu0 %vm709_vm0, %v708_v0  ;;  %v560_v3 = vld [vmem:[#allocation5 + $0x10] sm:$0xff]   ;;  %v566_v4 = vld [vmem:[#allocation7] sm:$0xff]   ;;  %v561_v5 = vld [vmem:[#allocation5 + $0x18] sm:$0xff]  }
  0x4b   :  { %509 = vmatprep.subr.bf16.mxu1 %v708_v0  ;;  %525 = vmatprep.mubr.msk.bf16.mxu1 %vm709_vm0, %v708_v0  ;;  %v567_v6 = vld [vmem:[#allocation7 + $0x8] sm:$0xff]   ;;  %v562_v7 = vld [vmem:[#allocation5 + $0x20] sm:$0xff]   ;;  %v568_v8 = vld [vmem:[#allocation7 + $0x10] sm:$0xff]   ;;  %v101_v25 = vshrl.u32 %v100_v24, 7 }
  0x4c   :  { %490 = vmatpush3.bf16.msra.mxu0 %v558_v1  ;;  %510 = vmatpush3.bf16.msra.mxu1 %v566_v4  ;;  %v563_v9 = vld [vmem:[#allocation5 + $0x28] sm:$0xff]   ;;  %v569_v10 = vld [vmem:[#allocation7 + $0x18] sm:$0xff]   ;;  %v564_v11 = vld [vmem:[#allocation5 + $0x30] sm:$0xff]  }
  0x4d   :  { %491 = vmatprep.subr.bf16.mxu0 %v708_v0  ;;  %511 = vmatprep.subr.bf16.mxu1 %v708_v0  ;;  %v570_v12 = vld [vmem:[#allocation7 + $0x20] sm:$0xff]   ;;  %v565_v13 = vld [vmem:[#allocation5 + $0x38] sm:$0xff]   ;;  %v571_v14 = vld [vmem:[#allocation7 + $0x28] sm:$0xff]   ;;  %v102_v28 = vsub.s32 0, %v101_v25 }
  0x4e   :  { %v81_v15 = vld [vmem:[#allocation2] sm:$0xf]  ;;  %v572_v16 = vld [vmem:[#allocation7 + $0x30] sm:$0xff]   ;;  %v574_v18 = vld [vmem:[#allocation8] sm:$0xff]  }
  0x4f   :  { %v573_v17 = vld [vmem:[#allocation7 + $0x38] sm:$0xff]   ;;  %v575_v19 = vld [vmem:[#allocation8 + $0x8] sm:$0xff]   ;;  %v576_v20 = vld [vmem:[#allocation8 + $0x10] sm:$0xff]  }
  0x50   :  { %492 = vmatpush3.bf16.msra.mxu0 %v559_v2  ;;  %512 = vmatpush3.bf16.msra.mxu1 %v567_v6  ;;  %v577_v21 = vld [vmem:[#allocation8 + $0x18] sm:$0xff]   ;;  %v578_v22 = vld [vmem:[#allocation8 + $0x20] sm:$0xff]   ;;  %v579_v23 = vld [vmem:[#allocation8 + $0x28] sm:$0xff]  }
  0x51   :  { %493 = vmatprep.subr.bf16.mxu0 %v708_v0  ;;  %513 = vmatprep.subr.bf16.mxu1 %v708_v0  ;;  %v98_v26 = vld [vmem:[%s861_s2] sm:$0x1]  ;;  %v580_v37 = vld [vmem:[#allocation8 + $0x30] sm:$0xff]  }
  0x52   :  { %v99_v27 = vunpack.c.l.bf16 %v98_v26  ;;  %v581_v38 = vld [vmem:[#allocation8 + $0x38] sm:$0xff]  }
  0x53   :  { %v210_v39 = vld [vmem:[%s863_s4] sm:$0x1]  ;;  %s710_s4 = smov [#allocation10]  }
  0x54   :  { %494 = vmatpush3.bf16.msra.mxu0 %v560_v3  ;;  %514 = vmatpush3.bf16.msra.mxu1 %v568_v8  ;;  %v103_v29 = vrot.slane %v99_v27, %v102_v28  ;;  %v211_v40 = vunpack.c.l.bf16 %v210_v39  ;;  %v322_v49 = vld [vmem:[%s865_s6] sm:$0x1]  ;;  %s427_s28 = sshll.u32 %s710_s4, 4  ;;  %s428_s28 = int_to_ptr.vmem [resolvable:$true] %s427_s28 }
  0x55   :  { %495 = vmatprep.subr.bf16.mxu0 %v708_v0  ;;  %515 = vmatprep.subr.bf16.mxu1 %v708_v0  ;;  %v323_v50 = vunpack.c.l.bf16 %v322_v49  ;;  %s672_s29 = scalar_lea.vmem %s428_s28, 128  ;;  %p677_p5 = scmp.lt.s32.totalorder %s428_s28, %s428_s28 }
  0x56   :  { %v215_v41 = vrot.slane %v211_v40, %v102_v28  ;;  %p673_p4 = scmp.ne.s32.totalorder %s428_s28, %s672_s29  ;;  %p678_p6 = scmp.lt.s32.totalorder %s672_s29, %s672_s29 }
  0x57   :  { %v327_v51 = vrot.slane %v323_v50, %v102_v28 }
  0x58   :  { %496 = vmatpush3.bf16.msra.mxu0 %v561_v5  ;;  %516 = vmatpush3.bf16.msra.mxu1 %v569_v10  ;;  %p679_p7 = por %p678_p6, %p677_p5 }
  0x59   :  { %497 = vmatprep.subr.bf16.mxu0 %v708_v0  ;;  %517 = vmatprep.subr.bf16.mxu1 %v708_v0 }
  0x5a   :  { %p680_p8 = pnand %p679_p7, %p673_p4 }
  0x5c   :  { %498 = vmatpush3.bf16.msra.mxu0 %v562_v7  ;;  %518 = vmatpush3.bf16.msra.mxu1 %v570_v12 }
  0x5d   :  { %499 = vmatprep.subr.bf16.mxu0 %v708_v0  ;;  %519 = vmatprep.subr.bf16.mxu1 %v708_v0 }
  0x60   :  { %500 = vmatpush3.bf16.msra.mxu0 %v563_v9  ;;  %520 = vmatpush3.bf16.msra.mxu1 %v571_v14 }
  0x61   :  { %501 = vmatprep.subr.bf16.mxu0 %v708_v0  ;;  %521 = vmatprep.subr.bf16.mxu1 %v708_v0 }
  0x64   :  { %502 = vmatpush3.bf16.msra.mxu0 %v564_v11  ;;  %522 = vmatpush3.bf16.msra.mxu1 %v572_v16 }
  0x65   :  { %503 = vmatprep.subr.bf16.mxu0 %v708_v0  ;;  %523 = vmatprep.subr.bf16.mxu1 %v708_v0 }
  0x68   :  { %504 = vmatpush3.bf16.msra.mxu0 %v565_v13  ;;  %524 = vmatpush3.bf16.msra.mxu1 %v573_v17 }
  0x69   :  { %529 = vmatprep.subr.bf16.mxu0 %v708_v0 }
  0x6b   :  { %506 = vmatmul.mubr.bf16.vlgmr.msra.gmra.mrb[0].mxu0 %v81_v15 }
  0x6c   :  { %545 = vmatprep.mubr.msk.bf16.mxu0 %vm709_vm0, %v708_v0  ;;  %530 = vmatpush3.bf16.msra.mxu0 %v574_v18 }
  0x6d   :  { %531 = vmatprep.subr.bf16.mxu0 %v708_v0 }
  0x70   :  { %532 = vmatpush3.bf16.msra.mxu0 %v575_v19 }
  0x71   :  { %533 = vmatprep.subr.bf16.mxu0 %v708_v0 }
  0x74   :  { %534 = vmatpush3.bf16.msra.mxu0 %v576_v20 }
  0x75   :  { %535 = vmatprep.subr.bf16.mxu0 %v708_v0 }
  0x78   :  { %536 = vmatpush3.bf16.msra.mxu0 %v577_v21 }
  0x79   :  { %537 = vmatprep.subr.bf16.mxu0 %v708_v0 }
  0x7c   :  { %538 = vmatpush3.bf16.msra.mxu0 %v578_v22 }
  0x7d   :  { %539 = vmatprep.subr.bf16.mxu0 %v708_v0 }
  0x80   :  { %540 = vmatpush3.bf16.msra.mxu0 %v579_v23 }
  0x81   :  { %541 = vmatprep.subr.bf16.mxu0 %v708_v0 }
  0x84   :  { %542 = vmatpush3.bf16.msra.mxu0 %v580_v37 }
  0x85   :  { %543 = vmatprep.subr.bf16.mxu0 %v708_v0 }
  0x88   :  { %544 = vmatpush3.bf16.msra.mxu0 %v581_v38 }
 0x13e   :  { %v186_v30 = vpop.f32.mrb[0].mxu0 }
 0x13f   :  { %v187_v31 = vadd.f32 %v186_v30, %v103_v29  ;;  %v507_v32 = vpop.f32.mrb[1].mxu0 }
 0x140   :  { %v189_v33 = vpop.f32.mrb[2].mxu0 }
 0x141   :  { %v192_v34 = vmax.f32 %v187_v31, 0.0  ;;  %v508_v35 = vpop.f32.mrb[3].mxu0 }
 0x143   :  { %v193_v36 = vpack.c.bf16 %v192_v34, %v192_v34 }
 0x145   :  { %526 = vmatmul.mubr.bf16.vlgmr.msra.gmra.mrb[0].mxu1 %v193_v36 }
 0x218   :  { %v298_v42 = vpop.f32.mrb[0].mxu1 }
 0x219   :  { %v299_v43 = vadd.f32 %v298_v42, %v215_v41  ;;  %v527_v44 = vpop.f32.mrb[1].mxu1 }
 0x21a   :  { %v301_v45 = vpop.f32.mrb[2].mxu1 }
 0x21b   :  { %v304_v46 = vmax.f32 %v299_v43, 0.0  ;;  %v528_v47 = vpop.f32.mrb[3].mxu1 }
 0x21d   :  { %v305_v48 = vpack.c.bf16 %v304_v46, %v304_v46 }
 0x21f   :  { %546 = vmatmul.mubr.bf16.vlgmr.msra.gmra.mrb[4].mxu0 %v305_v48 }
 0x2f2   :  { %v410_v52 = vpop.f32.mrb[4].mxu0 }
 0x2f3   :  { %v411_v53 = vadd.f32 %v410_v52, %v327_v51  ;;  %v547_v54 = vpop.f32.mrb[5].mxu0 }
 0x2f4   :  { %v413_v55 = vpop.f32.mrb[6].mxu0 }
 0x2f5   :  { %v416_v56 = vmul.f32 0.5, %v411_v53  ;;  %v548_v57 = vpop.f32.mrb[7].mxu0 }
 0x2f7   :  { %582 = vtanh.f32 %v416_v56 }
 0x301   :  { %v583_v58 = vpop.eup %582 }
 0x302   :  { %v418_v59 = vmul.f32 0.5, %v583_v58 }
 0x304   :  { %v419_v60 = vadd.f32 0.5, %v418_v59 }
 0x306   :  { %420 = vst [vmem:[#allocation10] sm:$0xff] %v419_v60 }
 0x307   :  { %683 = shalt.err (!%p680_p8)
}
 0x308   :  { %s684_s8 = scalar_lea.hbm %s866_s7, 128 }
 0x309   :  { %p685_p9 = scmp.ne.s32.totalorder %s866_s7, %s684_s8  ;;  %p688_p10 = scmp.lt.u32.totalorder %s684_s8, %s866_s7 }
 0x30b   :  { %p690_p11 = pnand %p688_p10, %p685_p9 }
 0x30d   :  { %693 = shalt.err (!%p690_p11)
}
 0x30e   :  { %430 = dma.vmem_to_hbm [thread:$0]  %s428_s28, 128, %s866_s7, [#allocation4]  }
 0x30f   :  { %700 = dma.done.wait [#allocation4], 128  }
 0x310   :  { %701 = vsyncadd [#allocation4], 4294967168 }
 0x311   :  { %434 = vsyncpa [#allocation3], 1 }
 0x312   :  { %435 = vsyncpa [#allocation6], 1 }
 0x313   :  { %436 = vsyncpa [#allocation9], 1 }
 0x314   :  { %437 = vsyncpa [#allocation4], 1 }

// kernel: tpu_custom_call.1
= control target key start
LH: loop header
LB: loop body
LE: loop exit
PB: predicated region body
PF: predicated region fallthrough
CT: control target
= control target key end

     0   :  { %12 = vsyncpa [#allocation3], 0  ;;  %s859_s0 = inlined_call_operand.hbm [shape: bf16[8,128], index: 0, kind: input, shape index: {}]   ;;  %s860_s1 = inlined_call_operand.hbm [shape: bf16[128,128], index: 1, kind: input, shape index: {}]   ;;  %s861_s2 = inlined_call_operand.vmem [shape: bf16[1,128], index: 2, kind: input, shape index: {}]   ;;  %s862_s3 = inlined_call_operand.hbm [shape: bf16[128,128], index: 3, kind: input, shape index: {}]   ;;  %s863_s4 = inlined_call_operand.vmem [shape: bf16[1,128], index: 4, kind: input, shape index: {}]   ;;  %s864_s5 = inlined_call_operand.hbm [shape: bf16[128,128], index: 5, kind: input, shape index: {}]   ;;  %s865_s6 = inlined_call_operand.vmem [shape: bf16[1,128], index: 6, kind: input, shape index: {}]   ;;  %s866_s7 = inlined_call_operand.hbm [shape: f32[8,128], index: 7, kind: output, shape index: {}]  }
   0x1   :  { %13 = vsyncpa [#allocation6], 0 }
   0x2   :  { %14 = vsyncpa [#allocation9], 0 }
   0x3   :  { %15 = vsyncpa [#allocation4], 0  ;;  %s702_s24 = smov [#allocation5]   ;;  %s584_s28 = scalar_lea.hbm %s860_s1, 1024 }
   0x4   :  { %s31_s25 = sshll.u32 %s702_s24, 4  ;;  %p585_p0 = scmp.ne.s32.totalorder %s860_s1, %s584_s28  ;;  %s32_s25 = int_to_ptr.vmem [resolvable:$true] %s31_s25 }
   0x5   :  { %p588_p1 = scmp.lt.u32.totalorder %s584_s28, %s860_s1 }
   0x7   :  { %p590_p2 = pnand %p588_p1, %p585_p0 }
   0x9   :  { %593 = shalt.err (!%p590_p2)
}
   0xa   :  { %s594_s10 = scalar_lea.vmem %s32_s25, 1024  ;;  %p599_p4 = scmp.lt.s32.totalorder %s32_s25, %s32_s25 }
   0xb   :  { %p595_p3 = scmp.ne.s32.totalorder %s32_s25, %s594_s10  ;;  %p600_p5 = scmp.lt.s32.totalorder %s594_s10, %s594_s10 }
   0xd   :  { %p601_p6 = por %p600_p5, %p599_p4 }
   0xf   :  { %p602_p7 = pnand %p601_p6, %p595_p3 }
  0x11   :  { %605 = shalt.err (!%p602_p7)
}
  0x12   :  { %s703_s11 = smov 64   ;;  %s704_s12 = smov 4  }
  0x13   :  { %37 = dma.hbm_to_vmem [thread:$0]  %s860_s1, 1024, %s32_s25, [#allocation6], %s703_s11, %s703_s11, %s704_s12  }
  0x14   :  { %s705_s15 = smov [#allocation2]   ;;  %s706_s17 = smov [#allocation7]  }
  0x15   :  { %s22_s16 = sshll.u32 %s705_s15, 4  ;;  %s45_s18 = sshll.u32 %s706_s17, 4  ;;  %s23_s16 = int_to_ptr.vmem [resolvable:$true] %s22_s16  ;;  %s46_s18 = int_to_ptr.vmem [resolvable:$true] %s45_s18 }
  0x16   :  { %s606_s21 = scalar_lea.hbm %s859_s0, 64 }
  0x17   :  { %p607_p8 = scmp.ne.s32.totalorder %s859_s0, %s606_s21  ;;  %p610_p9 = scmp.lt.u32.totalorder %s606_s21, %s859_s0 }
  0x19   :  { %p612_p10 = pnand %p610_p9, %p607_p8 }
  0x1b   :  { %615 = shalt.err (!%p612_p10)
}
  0x1c   :  { %s616_s1 = scalar_lea.vmem %s23_s16, 64  ;;  %p621_p12 = scmp.lt.s32.totalorder %s23_s16, %s23_s16 }
  0x1d   :  { %p617_p11 = scmp.ne.s32.totalorder %s23_s16, %s616_s1  ;;  %p622_p13 = scmp.lt.s32.totalorder %s616_s1, %s616_s1 }
  0x1f   :  { %p623_p0 = por %p622_p13, %p621_p12 }
  0x21   :  { %p624_p1 = pnand %p623_p0, %p617_p11 }
  0x23   :  { %627 = shalt.err (!%p624_p1)
}
  0x24   :  { %25 = dma.hbm_to_vmem [thread:$0]  %s859_s0, 64, %s23_s16, [#allocation3]  }
  0x25   :  { %s628_s30 = scalar_lea.hbm %s862_s3, 1024 }
  0x26   :  { %p629_p2 = scmp.ne.s32.totalorder %s862_s3, %s628_s30  ;;  %p632_p3 = scmp.lt.u32.totalorder %s628_s30, %s862_s3 }
  0x28   :  { %p634_p4 = pnand %p632_p3, %p629_p2 }
  0x2a   :  { %637 = shalt.err (!%p634_p4)
}
  0x2b   :  { %s638_s14 = scalar_lea.vmem %s46_s18, 1024  ;;  %p643_p6 = scmp.lt.s32.totalorder %s46_s18, %s46_s18 }
  0x2c   :  { %p639_p5 = scmp.ne.s32.totalorder %s46_s18, %s638_s14  ;;  %p644_p7 = scmp.lt.s32.totalorder %s638_s14, %s638_s14 }
  0x2e   :  { %p645_p8 = por %p644_p7, %p643_p6 }
  0x30   :  { %p646_p9 = pnand %p645_p8, %p639_p5 }
  0x32   :  { %649 = shalt.err (!%p646_p9)
}
  0x33   :  { %51 = dma.hbm_to_vmem [thread:$0]  %s862_s3, 1024, %s46_s18, [#allocation6], %s703_s11, %s703_s11, %s704_s12  }
  0x34   :  { %s707_s16 = smov [#allocation8]   ;;  %s650_s21 = scalar_lea.hbm %s864_s5, 1024 }
  0x35   :  { %s59_s17 = sshll.u32 %s707_s16, 4  ;;  %p651_p10 = scmp.ne.s32.totalorder %s864_s5, %s650_s21  ;;  %s60_s17 = int_to_ptr.vmem [resolvable:$true] %s59_s17 }
  0x36   :  { %p654_p11 = scmp.lt.u32.totalorder %s650_s21, %s864_s5 }
  0x38   :  { %p656_p12 = pnand %p654_p11, %p651_p10 }
  0x3a   :  { %659 = shalt.err (!%p656_p12)
}
  0x3b   :  { %s660_s1 = scalar_lea.vmem %s60_s17, 1024  ;;  %p665_p0 = scmp.lt.s32.totalorder %s60_s17, %s60_s17 }
  0x3c   :  { %p661_p13 = scmp.ne.s32.totalorder %s60_s17, %s660_s1  ;;  %p666_p1 = scmp.lt.s32.totalorder %s660_s1, %s660_s1 }
  0x3e   :  { %p667_p2 = por %p666_p1, %p665_p0 }
  0x40   :  { %p668_p3 = pnand %p667_p2, %p661_p13 }
  0x42   :  { %671 = shalt.err (!%p668_p3)
}
  0x43   :  { %65 = dma.hbm_to_vmem [thread:$0]  %s864_s5, 1024, %s60_s17, [#allocation9], %s703_s11, %s703_s11, %s704_s12  }
  0x44   :  { %694 = dma.done.wait [#allocation3], 64  }
  0x45   :  { %695 = vsyncadd [#allocation3], 4294967232 }
  0x46   :  { %696 = dma.done.wait [#allocation6], 2048  }
  0x47   :  { %697 = vsyncadd [#allocation6], 4294965248 }
  0x48   :  { %698 = dma.done.wait [#allocation9], 1024  }
  0x49   :  { %699 = vsyncadd [#allocation9], 4294966272  ;;  %v708_v0 = vmov 0.0   ;;  %vm709_vm0 = vmmov 0   ;;  %v558_v1 = vld [vmem:[#allocation5] sm:$0xff]   ;;  %v559_v2 = vld [vmem:[#allocation5 + $0x8] sm:$0xff]   ;;  %v100_v24 = vlaneseq }
  0x4a   :  { %489 = vmatprep.subr.bf16.mxu0 %v708_v0  ;;  %505 = vmatprep.mubr.msk.bf16.mxu0 %vm709_vm0, %v708_v0  ;;  %v560_v3 = vld [vmem:[#allocation5 + $0x10] sm:$0xff]   ;;  %v566_v4 = vld [vmem:[#allocation7] sm:$0xff]   ;;  %v561_v5 = vld [vmem:[#allocation5 + $0x18] sm:$0xff]  }
  0x4b   :  { %509 = vmatprep.subr.bf16.mxu1 %v708_v0  ;;  %525 = vmatprep.mubr.msk.bf16.mxu1 %vm709_vm0, %v708_v0  ;;  %v567_v6 = vld [vmem:[#allocation7 + $0x8] sm:$0xff]   ;;  %v562_v7 = vld [vmem:[#allocation5 + $0x20] sm:$0xff]   ;;  %v568_v8 = vld [vmem:[#allocation7 + $0x10] sm:$0xff]   ;;  %v101_v25 = vshrl.u32 %v100_v24, 7 }
  0x4c   :  { %490 = vmatpush3.bf16.msra.mxu0 %v558_v1  ;;  %510 = vmatpush3.bf16.msra.mxu1 %v566_v4  ;;  %v563_v9 = vld [vmem:[#allocation5 + $0x28] sm:$0xff]   ;;  %v569_v10 = vld [vmem:[#allocation7 + $0x18] sm:$0xff]   ;;  %v564_v11 = vld [vmem:[#allocation5 + $0x30] sm:$0xff]  }
  0x4d   :  { %491 = vmatprep.subr.bf16.mxu0 %v708_v0  ;;  %511 = vmatprep.subr.bf16.mxu1 %v708_v0  ;;  %v570_v12 = vld [vmem:[#allocation7 + $0x20] sm:$0xff]   ;;  %v565_v13 = vld [vmem:[#allocation5 + $0x38] sm:$0xff]   ;;  %v571_v14 = vld [vmem:[#allocation7 + $0x28] sm:$0xff]   ;;  %v102_v28 = vsub.s32 0, %v101_v25 }
  0x4e   :  { %v81_v15 = vld [vmem:[#allocation2] sm:$0xf]  ;;  %v572_v16 = vld [vmem:[#allocation7 + $0x30] sm:$0xff]   ;;  %v574_v18 = vld [vmem:[#allocation8] sm:$0xff]  }
  0x4f   :  { %v573_v17 = vld [vmem:[#allocation7 + $0x38] sm:$0xff]   ;;  %v575_v19 = vld [vmem:[#allocation8 + $0x8] sm:$0xff]   ;;  %v576_v20 = vld [vmem:[#allocation8 + $0x10] sm:$0xff]  }
  0x50   :  { %492 = vmatpush3.bf16.msra.mxu0 %v559_v2  ;;  %512 = vmatpush3.bf16.msra.mxu1 %v567_v6  ;;  %v577_v21 = vld [vmem:[#allocation8 + $0x18] sm:$0xff]   ;;  %v578_v22 = vld [vmem:[#allocation8 + $0x20] sm:$0xff]   ;;  %v579_v23 = vld [vmem:[#allocation8 + $0x28] sm:$0xff]  }
  0x51   :  { %493 = vmatprep.subr.bf16.mxu0 %v708_v0  ;;  %513 = vmatprep.subr.bf16.mxu1 %v708_v0  ;;  %v98_v26 = vld [vmem:[%s861_s2] sm:$0x1]  ;;  %v580_v37 = vld [vmem:[#allocation8 + $0x30] sm:$0xff]  }
  0x52   :  { %v99_v27 = vunpack.c.l.bf16 %v98_v26  ;;  %v581_v38 = vld [vmem:[#allocation8 + $0x38] sm:$0xff]  }
  0x53   :  { %v210_v39 = vld [vmem:[%s863_s4] sm:$0x1]  ;;  %s710_s4 = smov [#allocation10]  }
  0x54   :  { %494 = vmatpush3.bf16.msra.mxu0 %v560_v3  ;;  %514 = vmatpush3.bf16.msra.mxu1 %v568_v8  ;;  %v103_v29 = vrot.slane %v99_v27, %v102_v28  ;;  %v211_v40 = vunpack.c.l.bf16 %v210_v39  ;;  %v322_v49 = vld [vmem:[%s865_s6] sm:$0x1]  ;;  %s427_s28 = sshll.u32 %s710_s4, 4  ;;  %s428_s28 = int_to_ptr.vmem [resolvable:$true] %s427_s28 }
  0x55   :  { %495 = vmatprep.subr.bf16.mxu0 %v708_v0  ;;  %515 = vmatprep.subr.bf16.mxu1 %v708_v0  ;;  %v323_v50 = vunpack.c.l.bf16 %v322_v49  ;;  %s672_s29 = scalar_lea.vmem %s428_s28, 128  ;;  %p677_p5 = scmp.lt.s32.totalorder %s428_s28, %s428_s28 }
  0x56   :  { %v215_v41 = vrot.slane %v211_v40, %v102_v28  ;;  %p673_p4 = scmp.ne.s32.totalorder %s428_s28, %s672_s29  ;;  %p678_p6 = scmp.lt.s32.totalorder %s672_s29, %s672_s29 }
  0x57   :  { %v327_v51 = vrot.slane %v323_v50, %v102_v28 }
  0x58   :  { %496 = vmatpush3.bf16.msra.mxu0 %v561_v5  ;;  %516 = vmatpush3.bf16.msra.mxu1 %v569_v10  ;;  %p679_p7 = por %p678_p6, %p677_p5 }
  0x59   :  { %497 = vmatprep.subr.bf16.mxu0 %v708_v0  ;;  %517 = vmatprep.subr.bf16.mxu1 %v708_v0 }
  0x5a   :  { %p680_p8 = pnand %p679_p7, %p673_p4 }
  0x5c   :  { %498 = vmatpush3.bf16.msra.mxu0 %v562_v7  ;;  %518 = vmatpush3.bf16.msra.mxu1 %v570_v12 }
  0x5d   :  { %499 = vmatprep.subr.bf16.mxu0 %v708_v0  ;;  %519 = vmatprep.subr.bf16.mxu1 %v708_v0 }
  0x60   :  { %500 = vmatpush3.bf16.msra.mxu0 %v563_v9  ;;  %520 = vmatpush3.bf16.msra.mxu1 %v571_v14 }
  0x61   :  { %501 = vmatprep.subr.bf16.mxu0 %v708_v0  ;;  %521 = vmatprep.subr.bf16.mxu1 %v708_v0 }
  0x64   :  { %502 = vmatpush3.bf16.msra.mxu0 %v564_v11  ;;  %522 = vmatpush3.bf16.msra.mxu1 %v572_v16 }
  0x65   :  { %503 = vmatprep.subr.bf16.mxu0 %v708_v0  ;;  %523 = vmatprep.subr.bf16.mxu1 %v708_v0 }
  0x68   :  { %504 = vmatpush3.bf16.msra.mxu0 %v565_v13  ;;  %524 = vmatpush3.bf16.msra.mxu1 %v573_v17 }
  0x69   :  { %529 = vmatprep.subr.bf16.mxu0 %v708_v0 }
  0x6b   :  { %506 = vmatmul.mubr.bf16.vlgmr.msra.gmra.mrb[0].mxu0 %v81_v15 }
  0x6c   :  { %545 = vmatprep.mubr.msk.bf16.mxu0 %vm709_vm0, %v708_v0  ;;  %530 = vmatpush3.bf16.msra.mxu0 %v574_v18 }
  0x6d   :  { %531 = vmatprep.subr.bf16.mxu0 %v708_v0 }
  0x70   :  { %532 = vmatpush3.bf16.msra.mxu0 %v575_v19 }
  0x71   :  { %533 = vmatprep.subr.bf16.mxu0 %v708_v0 }
  0x74   :  { %534 = vmatpush3.bf16.msra.mxu0 %v576_v20 }
  0x75   :  { %535 = vmatprep.subr.bf16.mxu0 %v708_v0 }
  0x78   :  { %536 = vmatpush3.bf16.msra.mxu0 %v577_v21 }
  0x79   :  { %537 = vmatprep.subr.bf16.mxu0 %v708_v0 }
  0x7c   :  { %538 = vmatpush3.bf16.msra.mxu0 %v578_v22 }
  0x7d   :  { %539 = vmatprep.subr.bf16.mxu0 %v708_v0 }
  0x80   :  { %540 = vmatpush3.bf16.msra.mxu0 %v579_v23 }
  0x81   :  { %541 = vmatprep.subr.bf16.mxu0 %v708_v0 }
  0x84   :  { %542 = vmatpush3.bf16.msra.mxu0 %v580_v37 }
  0x85   :  { %543 = vmatprep.subr.bf16.mxu0 %v708_v0 }
  0x88   :  { %544 = vmatpush3.bf16.msra.mxu0 %v581_v38 }
 0x13e   :  { %v186_v30 = vpop.f32.mrb[0].mxu0 }
 0x13f   :  { %v187_v31 = vadd.f32 %v186_v30, %v103_v29  ;;  %v507_v32 = vpop.f32.mrb[1].mxu0 }
 0x140   :  { %v189_v33 = vpop.f32.mrb[2].mxu0 }
 0x141   :  { %v192_v34 = vmax.f32 %v187_v31, 0.0  ;;  %v508_v35 = vpop.f32.mrb[3].mxu0 }
 0x143   :  { %v193_v36 = vpack.c.bf16 %v192_v34, %v192_v34 }
 0x145   :  { %526 = vmatmul.mubr.bf16.vlgmr.msra.gmra.mrb[0].mxu1 %v193_v36 }
 0x218   :  { %v298_v42 = vpop.f32.mrb[0].mxu1 }
 0x219   :  { %v299_v43 = vadd.f32 %v298_v42, %v215_v41  ;;  %v527_v44 = vpop.f32.mrb[1].mxu1 }
 0x21a   :  { %v301_v45 = vpop.f32.mrb[2].mxu1 }
 0x21b   :  { %v304_v46 = vmax.f32 %v299_v43, 0.0  ;;  %v528_v47 = vpop.f32.mrb[3].mxu1 }
 0x21d   :  { %v305_v48 = vpack.c.bf16 %v304_v46, %v304_v46 }
 0x21f   :  { %546 = vmatmul.mubr.bf16.vlgmr.msra.gmra.mrb[4].mxu0 %v305_v48 }
 0x2f2   :  { %v410_v52 = vpop.f32.mrb[4].mxu0 }
 0x2f3   :  { %v411_v53 = vadd.f32 %v410_v52, %v327_v51  ;;  %v547_v54 = vpop.f32.mrb[5].mxu0 }
 0x2f4   :  { %v413_v55 = vpop.f32.mrb[6].mxu0 }
 0x2f5   :  { %v416_v56 = vmul.f32 0.5, %v411_v53  ;;  %v548_v57 = vpop.f32.mrb[7].mxu0 }
 0x2f7   :  { %582 = vtanh.f32 %v416_v56 }
 0x301   :  { %v583_v58 = vpop.eup %582 }
 0x302   :  { %v418_v59 = vmul.f32 0.5, %v583_v58 }
 0x304   :  { %v419_v60 = vadd.f32 0.5, %v418_v59 }
 0x306   :  { %420 = vst [vmem:[#allocation10] sm:$0xff] %v419_v60 }
 0x307   :  { %683 = shalt.err (!%p680_p8)
}
 0x308   :  { %s684_s8 = scalar_lea.hbm %s866_s7, 128 }
 0x309   :  { %p685_p9 = scmp.ne.s32.totalorder %s866_s7, %s684_s8  ;;  %p688_p10 = scmp.lt.u32.totalorder %s684_s8, %s866_s7 }
 0x30b   :  { %p690_p11 = pnand %p688_p10, %p685_p9 }
 0x30d   :  { %693 = shalt.err (!%p690_p11)
}
 0x30e   :  { %430 = dma.vmem_to_hbm [thread:$0]  %s428_s28, 128, %s866_s7, [#allocation4]  }
 0x30f   :  { %700 = dma.done.wait [#allocation4], 128  }
 0x310   :  { %701 = vsyncadd [#allocation4], 4294967168 }
 0x311   :  { %434 = vsyncpa [#allocation3], 1 }
 0x312   :  { %435 = vsyncpa [#allocation6], 1 }
 0x313   :  { %436 = vsyncpa [#allocation9], 1 }
 0x314   :  { %437 = vsyncpa [#allocation4], 1 }

</bundles_post_ra>
